<compile_context>
chip_gen: v5e
topology: v5e:2x2
jax: 0.10.0
libtpu: 0.0.40
codegen_flags: <defaults>
</compile_context>

<pallas_src>
import functools

import jax
import jax.numpy as jnp
from jax.experimental import pallas as pl
from jax.experimental.pallas import tpu as pltpu


def _round_up(x, m):
    return ((x + m - 1) // m) * m


def _pad2d(a, rows, cols):
    r, c = a.shape
    if r == rows and c == cols:
        return a
    return jnp.pad(a, ((0, rows - r), (0, cols - c)))


def mlp_kernel(x_ref, w1_ref, b1_ref, w2_ref, b2_ref, o_ref):
    # x_ref : (TB, Din_p)    f32  VMEM  (per-grid-step batch tile)
    # w1_ref: (H_p, Din_p)   bf16 VMEM  (resident, PyTorch (out,in) layout)
    # b1_ref: (1, H_p)       f32  VMEM
    # w2_ref: (Dout_p, H_p)  bf16 VMEM  (resident, PyTorch (out,in) layout)
    # b2_ref: (1, Dout_p)    f32  VMEM
    # o_ref : (TB, Dout_p)   f32  VMEM
    x = x_ref[...].astype(jnp.bfloat16)

    # fc1: x @ w1.T -> contract the in_features dim of both operands (no transpose needed).
    h = jax.lax.dot_general(
        x, w1_ref[...],
        dimension_numbers=(((1,), (1,)), ((), ())),
        preferred_element_type=jnp.float32,
    )
    h = jnp.maximum(h + b1_ref[...], 0.0)  # bias + ReLU in f32 (VPU epilogue)

    # F.dropout with p=0 is the identity.
    # TODO(synk): dropout with p>0 would need pltpu.prng_seed/prng_random_bits masking.

    # fc2: h @ w2.T, bf16 MXU inputs, f32 accumulation.
    out = jax.lax.dot_general(
        h.astype(jnp.bfloat16), w2_ref[...],
        dimension_numbers=(((1,), (1,)), ((), ())),
        preferred_element_type=jnp.float32,
    )
    o_ref[...] = (out + b2_ref[...]).astype(o_ref.dtype)


@functools.partial(jax.jit, static_argnames=("batch_tile",))
def mlp_forward(x, w1, b1, w2, b2, *, batch_tile=256):
    """x: (B, D_in); w1: (H, D_in); b1: (H,); w2: (D_out, H); b2: (D_out,)."""
    B, d_in = x.shape
    hid = w1.shape[0]
    d_out = w2.shape[0]

    # Lane-dense padding: feature dims -> multiples of 128, batch -> tile multiple.
    d_in_p = _round_up(d_in, 128)
    hid_p = _round_up(hid, 128)
    d_out_p = _round_up(d_out, 128)
    tb = min(batch_tile, _round_up(B, 8))
    b_p = _round_up(B, tb)

    x_p = _pad2d(x, b_p, d_in_p)
    # Parameter prep (amortizable across calls): zero-pad + cast weights to bf16.
    w1_p = _pad2d(w1, hid_p, d_in_p).astype(jnp.bfloat16)
    w2_p = _pad2d(w2, d_out_p, hid_p).astype(jnp.bfloat16)
    b1_p = _pad2d(b1.reshape(1, hid), 1, hid_p)
    b2_p = _pad2d(b2.reshape(1, d_out), 1, d_out_p)

    grid = (b_p // tb,)

    # VMEM budget: double-buffered x/out tiles + resident bf16 weights + slack,
    # clamped to v7x's 64 MiB physical VMEM so the same tiling runs everywhere.
    vmem_bytes = (
        2 * tb * d_in_p * 4
        + 2 * tb * d_out_p * 4
        + (hid_p * d_in_p + d_out_p * hid_p) * 2
        + (hid_p + d_out_p) * 4
        + (4 << 20)
    )
    vmem_limit = int(min(max(vmem_bytes, 32 << 20), 64 << 20))
    # TODO(synk): for very large hidden sizes (resident weights > ~48 MiB) add a
    # K-reduction grid axis with a pl.when-initialized f32 accumulator instead.

    cost = pl.CostEstimate(
        flops=2 * B * (d_in * hid + hid * d_out),
        transcendentals=0,
        bytes_accessed=(x.size * 4 + w1.size * 2 + w2.size * 2
                        + (hid + d_out) * 4 + B * d_out * 4),
    )

    out_p = pl.pallas_call(
        mlp_kernel,
        out_shape=jax.ShapeDtypeStruct((b_p, d_out_p), x.dtype),
        grid=grid,
        in_specs=[
            pl.BlockSpec((tb, d_in_p), lambda i: (i, 0)),       # x: tiled over batch
            pl.BlockSpec((hid_p, d_in_p), lambda i: (0, 0)),    # w1: resident
            pl.BlockSpec((1, hid_p), lambda i: (0, 0)),         # b1: resident
            pl.BlockSpec((d_out_p, hid_p), lambda i: (0, 0)),   # w2: resident
            pl.BlockSpec((1, d_out_p), lambda i: (0, 0)),       # b2: resident
        ],
        out_specs=pl.BlockSpec((tb, d_out_p), lambda i: (i, 0)),
        compiler_params=pltpu.CompilerParams(
            dimension_semantics=("parallel",),
            vmem_limit_bytes=vmem_limit,
        ),
        cost_estimate=cost,
    )(x_p, w1_p, b1_p, w2_p, b2_p)

    # Strip batch / lane padding outside the kernel (cheap XLA slice).
    return out_p[:B, :d_out]


if __name__ == "__main__":
    # Small shapes consistent with the module's forward (defaults are 200/150/2).
    batch, input_size, hidden_size, output_size = 8, 32, 24, 2

    key = jax.random.PRNGKey(0)
    kx, kw1, kb1, kw2, kb2 = jax.random.split(key, 5)

    x = jax.random.normal(kx, (batch, input_size), dtype=jnp.float32)

    # Deterministic init mimicking nn.Linear's uniform(-1/sqrt(fan_in), 1/sqrt(fan_in)).
    lim1 = 1.0 / jnp.sqrt(jnp.float32(input_size))
    w1 = jax.random.uniform(kw1, (hidden_size, input_size), jnp.float32, -lim1, lim1)
    b1 = jax.random.uniform(kb1, (hidden_size,), jnp.float32, -lim1, lim1)
    lim2 = 1.0 / jnp.sqrt(jnp.float32(hidden_size))
    w2 = jax.random.uniform(kw2, (output_size, hidden_size), jnp.float32, -lim2, lim2)
    b2 = jax.random.uniform(kb2, (output_size,), jnp.float32, -lim2, lim2)

    out = mlp_forward(x, w1, b1, w2, b2)
    out = jax.block_until_ready(out)
    assert out.shape == (batch, output_size)

    # Semantics check vs the f32 PyTorch-equivalent reference (loose tolerance:
    # kernel deliberately feeds the MXU bf16 operands with f32 accumulation).
    ref_f32 = jnp.maximum(x @ w1.T + b1, 0.0) @ w2.T + b2
    assert jnp.allclose(out, ref_f32, atol=3e-2, rtol=3e-2)

    # Tighter check vs a reference that mimics the kernel's bf16/f32 precision path.
    dn = (((1,), (1,)), ((), ()))
    h_ref = jnp.maximum(
        jax.lax.dot_general(x.astype(jnp.bfloat16), w1.astype(jnp.bfloat16), dn,
                            preferred_element_type=jnp.float32) + b1, 0.0)
    ref_bf16 = jax.lax.dot_general(h_ref.astype(jnp.bfloat16), w2.astype(jnp.bfloat16), dn,
                                   preferred_element_type=jnp.float32) + b2
    assert jnp.allclose(out, ref_bf16, atol=1e-2, rtol=1e-2)

    print("KERNEL_OK")
</pallas_src>

<mosaic_0001>
module attributes {stable_mosaic.version = 11 : i64} {
  func.func @mlp_kernel(%arg0: i32, %arg1: memref<8x128xf32, #tpu.memory_space<vmem>>, %arg2: memref<128x128xbf16, #tpu.memory_space<vmem>>, %arg3: memref<1x128xf32, #tpu.memory_space<vmem>>, %arg4: memref<128x128xbf16, #tpu.memory_space<vmem>>, %arg5: memref<1x128xf32, #tpu.memory_space<vmem>>, %arg6: memref<8x128xf32, #tpu.memory_space<vmem>>) attributes {dimension_semantics = [#tpu.dimension_semantics<parallel>], iteration_bounds = array<i64: 1>, scalar_prefetch = 0 : i64, scratch_operands = 0 : i64, tpu.core_type = #tpu.core_type<tc>, window_params = [{transform_indices = @transform_0, window_bounds = array<i64: 8, 128>}, {pipeline_mode = #tpu.pipeline_mode<synchronous>, transform_indices = @transform_1, window_bounds = array<i64: 128, 128>}, {pipeline_mode = #tpu.pipeline_mode<synchronous>, transform_indices = @transform_2, window_bounds = array<i64: 1, 128>}, {pipeline_mode = #tpu.pipeline_mode<synchronous>, transform_indices = @transform_3, window_bounds = array<i64: 128, 128>}, {pipeline_mode = #tpu.pipeline_mode<synchronous>, transform_indices = @transform_4, window_bounds = array<i64: 1, 128>}, {transform_indices = @transform_5, window_bounds = array<i64: 8, 128>}]} {
    %c0 = arith.constant 0 : index
    %c0_0 = arith.constant 0 : index
    %0 = vector.load %arg1[%c0, %c0_0] : memref<8x128xf32, #tpu.memory_space<vmem>>, vector<8x128xf32>
    %1 = arith.truncf %0 : vector<8x128xf32> to vector<8x128xbf16>
    %c0_1 = arith.constant 0 : index
    %c0_2 = arith.constant 0 : index
    %2 = vector.load %arg2[%c0_1, %c0_2] : memref<128x128xbf16, #tpu.memory_space<vmem>>, vector<128x128xbf16>
    %cst = arith.constant dense<0.000000e+00> : vector<8x128xf32>
    %3 = tpu.matmul %1, %2, %cst {dimension_numbers = #tpu.dot_dimension_numbers<[1], [1], [0], [0], [0, 0, 1, 0], [], []>} : vector<8x128xbf16>, vector<128x128xbf16>, vector<8x128xf32> -> vector<8x128xf32>
    %c0_3 = arith.constant 0 : index
    %c0_4 = arith.constant 0 : index
    %4 = vector.load %arg3[%c0_3, %c0_4] : memref<1x128xf32, #tpu.memory_space<vmem>>, vector<1x128xf32>
    %5 = vector.broadcast %4 : vector<1x128xf32> to vector<8x128xf32>
    %6 = arith.addf %3, %5 : vector<8x128xf32>
    %cst_5 = arith.constant 0.000000e+00 : f32
    %7 = vector.broadcast %cst_5 : f32 to vector<8x128xf32>
    %8 = arith.maximumf %6, %7 : vector<8x128xf32>
    %9 = arith.truncf %8 : vector<8x128xf32> to vector<8x128xbf16>
    %c0_6 = arith.constant 0 : index
    %c0_7 = arith.constant 0 : index
    %10 = vector.load %arg4[%c0_6, %c0_7] : memref<128x128xbf16, #tpu.memory_space<vmem>>, vector<128x128xbf16>
    %cst_8 = arith.constant dense<0.000000e+00> : vector<8x128xf32>
    %11 = tpu.matmul %9, %10, %cst_8 {dimension_numbers = #tpu.dot_dimension_numbers<[1], [1], [0], [0], [0, 0, 1, 0], [], []>} : vector<8x128xbf16>, vector<128x128xbf16>, vector<8x128xf32> -> vector<8x128xf32>
    %c0_9 = arith.constant 0 : index
    %c0_10 = arith.constant 0 : index
    %12 = vector.load %arg5[%c0_9, %c0_10] : memref<1x128xf32, #tpu.memory_space<vmem>>, vector<1x128xf32>
    %13 = vector.broadcast %12 : vector<1x128xf32> to vector<8x128xf32>
    %14 = arith.addf %11, %13 : vector<8x128xf32>
    %c0_11 = arith.constant 0 : index
    %c0_12 = arith.constant 0 : index
    %15 = vector.load %arg6[%c0_11, %c0_12] : memref<8x128xf32, #tpu.memory_space<vmem>>, vector<8x128xf32>
    tpu.vector_store %arg6[%c0_11, %c0_12], %14 {strides = array<i32>} : memref<8x128xf32, #tpu.memory_space<vmem>>, vector<8x128xf32>,
    return
  }
  func.func @transform_0(%arg0: i32) -> (i32, i32) {
    %c0_i32 = arith.constant 0 : i32
    %c0_i32_0 = arith.constant 0 : i32
    return %arg0, %c0_i32 : i32, i32
  }
  func.func @transform_1(%arg0: i32) -> (i32, i32) {
    %c0_i32 = arith.constant 0 : i32
    %c0_i32_0 = arith.constant 0 : i32
    %c0_i32_1 = arith.constant 0 : i32
    return %c0_i32, %c0_i32_0 : i32, i32
  }
  func.func @transform_2(%arg0: i32) -> (i32, i32) {
    %c0_i32 = arith.constant 0 : i32
    %c0_i32_0 = arith.constant 0 : i32
    %c0_i32_1 = arith.constant 0 : i32
    return %c0_i32, %c0_i32_0 : i32, i32
  }
  func.func @transform_3(%arg0: i32) -> (i32, i32) {
    %c0_i32 = arith.constant 0 : i32
    %c0_i32_0 = arith.constant 0 : i32
    %c0_i32_1 = arith.constant 0 : i32
    return %c0_i32, %c0_i32_0 : i32, i32
  }
  func.func @transform_4(%arg0: i32) -> (i32, i32) {
    %c0_i32 = arith.constant 0 : i32
    %c0_i32_0 = arith.constant 0 : i32
    %c0_i32_1 = arith.constant 0 : i32
    return %c0_i32, %c0_i32_0 : i32, i32
  }
  func.func @transform_5(%arg0: i32) -> (i32, i32) {
    %c0_i32 = arith.constant 0 : i32
    %c0_i32_0 = arith.constant 0 : i32
    return %arg0, %c0_i32 : i32, i32
  }
}

</mosaic_0001>

<bundles_post_ra>
// kernel: mlp_forward.1
= control target key start
LH: loop header
LB: loop body
LE: loop exit
PB: predicated region body
PF: predicated region fallthrough
CT: control target
= control target key end

     0   :  { %s363_s1 = inlined_call_operand.vmem [shape: bf16[128,128], index: 1, kind: input, shape index: {}]   ;;  %s364_s2 = inlined_call_operand.vmem [shape: f32[1,128], index: 2, kind: input, shape index: {}]   ;;  %s365_s3 = inlined_call_operand.vmem [shape: bf16[128,128], index: 3, kind: input, shape index: {}]   ;;  %s366_s0 = inlined_call_operand.vmem [shape: f32[8,128], index: 0, kind: input, shape index: {}]   ;;  %s367_s4 = inlined_call_operand.vmem [shape: f32[1,128], index: 4, kind: input, shape index: {}]   ;;  %s368_s5 = inlined_call_operand.vmem [shape: f32[8,128], index: 5, kind: output, shape index: {}]  }
   0x1   :  { %v262_v0 = vld [vmem:[%s363_s1 + $0x38] sm:$0xff]  ;;  %v261_v1 = vld [vmem:[%s363_s1 + $0x30] sm:$0xff]  ;;  %v260_v2 = vld [vmem:[%s363_s1 + $0x28] sm:$0xff] }
   0x2   :  { %90 = vmatpush.bf16.xpose.msra.mxu0 %v262_v0  ;;  %v259_v3 = vld [vmem:[%s363_s1 + $0x20] sm:$0xff]  ;;  %v258_v4 = vld [vmem:[%s363_s1 + $0x18] sm:$0xff]  ;;  %v257_v6 = vld [vmem:[%s363_s1 + $0x10] sm:$0xff] }
   0x3   :  { %v270_v5 = vld [vmem:[%s365_s3 + $0x38] sm:$0xff]  ;;  %v269_v7 = vld [vmem:[%s365_s3 + $0x30] sm:$0xff]  ;;  %v256_v8 = vld [vmem:[%s363_s1 + $0x8] sm:$0xff] }
   0x4   :  { %173 = vmatpush.bf16.xpose.msra.mxu1 %v270_v5  ;;  %v268_v9 = vld [vmem:[%s365_s3 + $0x28] sm:$0xff]  ;;  %v255_v10 = vld [vmem:[%s363_s1] sm:$0xff]  ;;  %v266_v14 = vld [vmem:[%s365_s3 + $0x18] sm:$0xff] }
   0x5   :  { %v267_v11 = vld [vmem:[%s365_s3 + $0x20] sm:$0xff]  ;;  %v265_v15 = vld [vmem:[%s365_s3 + $0x10] sm:$0xff]  ;;  %v264_v16 = vld [vmem:[%s365_s3 + $0x8] sm:$0xff] }
   0x6   :  { %v20_v12 = vld [vmem:[%s366_s0] sm:$0xff] }
   0x7   :  { %v21_v13 = vpack.c.bf16 %v20_v12, %v20_v12  ;;  %v263_v17 = vld [vmem:[%s365_s3] sm:$0xff] }
   0x8   :  { %v271_v18 = vld [vmem:[%s364_s2] ss:$0 sm:$0xff] }
   0x9   :  { %v272_v24 = vld [vmem:[%s367_s4] ss:$0 sm:$0xff] }
   0xa   :  { %91 = vmatpush.bf16.xpose.msra.mxu0 %v261_v1 }
   0xc   :  { %174 = vmatpush.bf16.xpose.msra.mxu1 %v269_v7 }
  0x12   :  { %92 = vmatpush.bf16.xpose.msra.mxu0 %v260_v2 }
  0x14   :  { %175 = vmatpush.bf16.xpose.msra.mxu1 %v268_v9 }
  0x1a   :  { %93 = vmatpush.bf16.xpose.msra.mxu0 %v259_v3 }
  0x1c   :  { %176 = vmatpush.bf16.xpose.msra.mxu1 %v267_v11 }
  0x22   :  { %94 = vmatpush.bf16.xpose.msra.mxu0 %v258_v4 }
  0x24   :  { %177 = vmatpush.bf16.xpose.msra.mxu1 %v266_v14 }
  0x2a   :  { %95 = vmatpush.bf16.xpose.msra.mxu0 %v257_v6 }
  0x2c   :  { %178 = vmatpush.bf16.xpose.msra.mxu1 %v265_v15 }
  0x32   :  { %96 = vmatpush.bf16.xpose.msra.mxu0 %v256_v8 }
  0x34   :  { %179 = vmatpush.bf16.xpose.msra.mxu1 %v264_v16 }
  0x3a   :  { %97 = vmatpush.bf16.xpose.msra.mxu0 %v255_v10 }
  0x3c   :  { %180 = vmatpush.bf16.xpose.msra.mxu1 %v263_v17 }
  0x41   :  { %98 = vmatmul.bf16.vlgmr.msra.gmra.mxu0 %v21_v13 }
  0xbe   :  { %v99_v19 = vpop.f32.mrf.mxu0 }
  0xbf   :  { %v100_v20 = vadd.f32 %v271_v18, %v99_v19 }
  0xc1   :  { %v103_v21 = vmax.f32 %v100_v20, 0.0 }
  0xc3   :  { %v104_v22 = vpack.c.bf16 %v103_v21, %v103_v21 }
  0xc5   :  { %181 = vmatmul.bf16.vlgmr.msra.gmra.mxu1 %v104_v22 }
  0xc6   :  { %v101_v23 = vpop.f32.mrf.mxu0 }
 0x142   :  { %v182_v25 = vpop.f32.mrf.mxu1 }
 0x143   :  { %v183_v26 = vadd.f32 %v272_v24, %v182_v25 }
 0x145   :  { %186 = vst [vmem:[%s368_s5] sm:$0xff] %v183_v26 }
 0x14a   :  { %v184_v27 = vpop.f32.mrf.mxu1 }

</bundles_post_ra>
